<compile_context>
chip_gen: v7x
topology: tpu7x:2x2x1
jax: 0.10.0
libtpu: 0.0.40
codegen_flags: <defaults>
</compile_context>

<pallas_src>
import functools

import jax
import jax.numpy as jnp
from jax.experimental import pallas as pl
from jax.experimental.pallas import tpu as pltpu


_MAX_BLOCK_BYTES = 4 * 1024 * 1024          # roofline knee is ~1-4 MiB blocks
_MAX_BLOCK_BYTES_UPCAST = 2 * 1024 * 1024   # sub-32-bit input upcast to f32
_VMEM_LIMIT_BYTES = 32 * 1024 * 1024        # safe on v7x (64 MiB) and v5e/v6e


def _swish_kernel(x_ref, o_ref, *, compute_dtype):
    x = x_ref[...].astype(compute_dtype)
    # silu(x) = x * sigmoid(x) = 0.5 * x * (1 + tanh(x/2)):
    # a single EUP push (tanh) per element instead of exp + reciprocal, so the
    # EUP VLIW slot stays below the HBM roofline on v7x.
    o_ref[...] = (0.5 * x * (1.0 + jnp.tanh(0.5 * x))).astype(o_ref.dtype)


def _round_up(a: int, b: int) -> int:
    return ((a + b - 1) // b) * b


@functools.lru_cache(maxsize=1)
def _num_tensorcores() -> int:
    """2 on v7x (two TensorCores per chip), 1 on v5e/v6e; safe fallback 1."""
    try:
        kind = jax.devices()[0].device_kind.lower()
    except Exception:
        return 1
    return 2 if "v7" in kind else 1


@functools.lru_cache(maxsize=1)
def _has_bf16_vector_units() -> bool:
    """v6e / v7x have bf16 VPU + EUP; v5e and older do not."""
    try:
        kind = jax.devices()[0].device_kind.lower()
    except Exception:
        return False
    return any(tag in kind for tag in ("v6", "v7"))


def _compute_dtype_for(dtype) -> jnp.dtype:
    if dtype == jnp.float32:
        return jnp.float32
    if dtype == jnp.bfloat16 and _has_bf16_vector_units():
        # Native bf16 compute: halves vreg pressure / doubles VPU+EUP element
        # throughput exactly where the EUP is closest to binding.
        return jnp.bfloat16
    return jnp.float32


def _pick_2d_view(shape, n):
    """Zero-copy 2D view (rows, cols) of a contiguous array of n elements."""
    # 1) Fully lane-dense flat view when the element count allows it: no masked
    #    stores anywhere, widest contiguous rows.
    for w in (2048, 1024, 512, 256, 128):
        if n % w == 0:
            return n // w, w
    # 2) Ragged: merge trailing dims until their product is >= 128 (keeps the
    #    masked-store waste of the single edge block < ~2x).  Still a pure
    #    dim-collapse -> no pad / slice / extra HBM pass.
    cols = 1
    for d in reversed(shape):
        cols *= d
        if cols >= 128:
            break
    return n // cols, cols


def _swish_2d(x2d, compute_dtype, num_cores):
    rows, cols = x2d.shape
    dtype = x2d.dtype
    itemsize = jnp.dtype(dtype).itemsize
    sublane = 8 * max(1, 4 // itemsize)          # 8 for f32, 16 for bf16

    upcast = jnp.dtype(compute_dtype).itemsize > itemsize
    block_bytes = _MAX_BLOCK_BYTES_UPCAST if upcast else _MAX_BLOCK_BYTES

    # Lane (last-dim) tiling: full extent when it fits a block, otherwise
    # 128-multiples with a masked partial edge block.
    max_cols = max(128, (block_bytes // (sublane * itemsize)) // 128 * 128)
    tile_cols = cols if cols <= max_cols else max_cols

    # Row tiling: multiples of the sublane packing (partial edge block is fine).
    max_rows = max(sublane,
                   (block_bytes // (tile_cols * itemsize)) // sublane * sublane)
    if rows <= sublane:
        tile_rows = rows
    else:
        steps = pl.cdiv(rows, max_rows)
        if num_cores >= 2:
            # Keep both v7x TensorCores busy and (for small grids) balanced.
            steps = max(steps, 2)
            if steps < 8 and steps % 2:
                steps += 1
        tile_rows = min(max_rows, _round_up(pl.cdiv(rows, steps), sublane))
        if tile_rows >= rows:
            tile_rows = rows                     # single full-extent block

    grid = (pl.cdiv(rows, tile_rows), pl.cdiv(cols, tile_cols))
    kernel = functools.partial(_swish_kernel, compute_dtype=compute_dtype)

    return pl.pallas_call(
        kernel,
        out_shape=jax.ShapeDtypeStruct((rows, cols), dtype),
        grid_spec=pl.GridSpec(
            grid=grid,
            in_specs=[pl.BlockSpec((tile_rows, tile_cols), lambda i, j: (i, j))],
            out_specs=pl.BlockSpec((tile_rows, tile_cols), lambda i, j: (i, j)),
        ),
        compiler_params=pltpu.CompilerParams(
            dimension_semantics=("parallel", "parallel"),
            vmem_limit_bytes=_VMEM_LIMIT_BYTES,
        ),
    )(x2d)


def swish(x: jax.Array) -> jax.Array:
    """Applies SiLU (x * sigmoid(x)) elementwise to an arbitrarily-shaped array."""
    dtype = x.dtype
    if not jnp.issubdtype(dtype, jnp.floating):
        raise TypeError(f"swish expects a floating-point dtype, got {dtype}")
    if jnp.dtype(dtype).itemsize > 4:
        raise TypeError(f"64-bit dtypes are not supported on TPU: {dtype}")

    orig_shape = x.shape
    n = x.size
    if n == 0:
        return x

    rows, cols = _pick_2d_view(orig_shape, n)
    x2d = x.reshape(rows, cols)   # contiguous dim-collapse: no data movement
    y2d = _swish_2d(x2d, _compute_dtype_for(dtype), _num_tensorcores())
    return y2d.reshape(orig_shape)


if __name__ == "__main__":
    key = jax.random.PRNGKey(0)

    # Primary case: NCHW activation (128-divisible -> fully lane-dense path).
    x = jax.random.normal(key, (2, 4, 16, 16), dtype=jnp.float32)
    y = swish(x)
    jax.block_until_ready(y)
    ref = x * jax.nn.sigmoid(x)
    assert y.shape == x.shape and y.dtype == x.dtype
    assert jnp.allclose(y, ref, atol=1e-5, rtol=1e-5)

    k1, k2, k3 = jax.random.split(key, 3)

    # Larger input: multiple row blocks (both TensorCores share it on v7x).
    x2 = jax.random.normal(k1, (4, 8, 32, 32), dtype=jnp.float32)
    y2 = swish(x2)
    jax.block_until_ready(y2)
    assert jnp.allclose(y2, x2 * jax.nn.sigmoid(x2), atol=1e-5, rtol=1e-5)

    # Ragged f32 (no dim product is a multiple of 128): zero-copy masked-edge path.
    x3 = jax.random.normal(k2, (3, 7, 65), dtype=jnp.float32)
    y3 = swish(x3)
    jax.block_until_ready(y3)
    assert jnp.allclose(y3, x3 * jax.nn.sigmoid(x3), atol=1e-5, rtol=1e-5)

    # Tiny ragged bf16 (n < 128): single full-extent block; native bf16 on v6e+.
    x4 = jax.random.normal(k3, (3, 5, 7), dtype=jnp.bfloat16)
    y4 = swish(x4)
    jax.block_until_ready(y4)
    x4f = x4.astype(jnp.float32)
    ref4 = (x4f * jax.nn.sigmoid(x4f)).astype(jnp.bfloat16).astype(jnp.float32)
    assert y4.shape == x4.shape and y4.dtype == x4.dtype
    assert jnp.allclose(y4.astype(jnp.float32), ref4, atol=3e-2, rtol=3e-2)

    print("KERNEL_OK")
</pallas_src>

<mosaic_0001>
module attributes {stable_mosaic.version = 11 : i64} {
  func.func @_swish_kernel(%arg0: i32, %arg1: i32, %arg2: memref<1x2048xf32, #tpu.memory_space<vmem>>, %arg3: memref<1x2048xf32, #tpu.memory_space<vmem>>) attributes {dimension_semantics = [#tpu.dimension_semantics<parallel>, #tpu.dimension_semantics<parallel>], iteration_bounds = array<i64: 1, 1>, scalar_prefetch = 0 : i64, scratch_operands = 0 : i64, tpu.core_type = #tpu.core_type<tc>, window_params = [{transform_indices = @transform_0, window_bounds = array<i64: 1, 2048>}, {transform_indices = @transform_1, window_bounds = array<i64: 1, 2048>}]} {
    %c0 = arith.constant 0 : index
    %c0_0 = arith.constant 0 : index
    %0 = vector.load %arg2[%c0, %c0_0] : memref<1x2048xf32, #tpu.memory_space<vmem>>, vector<1x2048xf32>
    %cst = arith.constant 5.000000e-01 : f32
    %1 = vector.broadcast %cst : f32 to vector<1x2048xf32>
    %2 = arith.mulf %1, %0 : vector<1x2048xf32>
    %cst_1 = arith.constant 5.000000e-01 : f32
    %3 = vector.broadcast %cst_1 : f32 to vector<1x2048xf32>
    %4 = arith.mulf %3, %0 : vector<1x2048xf32>
    %5 = math.tanh %4 : vector<1x2048xf32>
    %cst_2 = arith.constant 1.000000e+00 : f32
    %6 = vector.broadcast %cst_2 : f32 to vector<1x2048xf32>
    %7 = arith.addf %6, %5 : vector<1x2048xf32>
    %8 = arith.mulf %2, %7 : vector<1x2048xf32>
    %c0_3 = arith.constant 0 : index
    %c0_4 = arith.constant 0 : index
    %9 = vector.load %arg3[%c0_3, %c0_4] : memref<1x2048xf32, #tpu.memory_space<vmem>>, vector<1x2048xf32>
    tpu.vector_store %arg3[%c0_3, %c0_4], %8 {strides = array<i32>} : memref<1x2048xf32, #tpu.memory_space<vmem>>, vector<1x2048xf32>,
    return
  }
  func.func @transform_0(%arg0: i32, %arg1: i32) -> (i32, i32) {
    %c0_i32 = arith.constant 0 : i32
    return %arg0, %arg1 : i32, i32
  }
  func.func @transform_1(%arg0: i32, %arg1: i32) -> (i32, i32) {
    %c0_i32 = arith.constant 0 : i32
    return %arg0, %arg1 : i32, i32
  }
}

</mosaic_0001>

<bundles_post_ra>
// kernel: tpu_custom_call.1
= control target key start
LH: loop header
LB: loop body
LE: loop exit
PB: predicated region body
PF: predicated region fallthrough
CT: control target
= control target key end

     0   :  { %6 = vsyncpa [#allocation3], 0  ;;  %s138_s0 = inlined_call_operand.hbm [shape: f32[1,2048], index: 0, kind: input, shape index: {}]   ;;  %s139_s1 = inlined_call_operand.hbm [shape: f32[1,2048], index: 1, kind: output, shape index: {}]  }
   0x1   :  { %7 = vsyncpa [#allocation4], 0  ;;  %s102_s6 = smov [#allocation2]   ;;  %s54_s10 = scalar_lea.hbm %s138_s0, 256 }
   0x2   :  { %s14_s7 = sshll.u32 %s102_s6, 4  ;;  %p55_p0 = scmp.ne.s32.totalorder %s138_s0, %s54_s10  ;;  %s15_s7 = int_to_ptr.vmem [resolvable:$true] %s14_s7 }
   0x3   :  { %p58_p1 = scmp.lt.u32.totalorder %s54_s10, %s138_s0 }
   0x5   :  { %p60_p2 = pnand %p58_p1, %p55_p0 }
   0x7   :  { %63 = shalt.err (!%p60_p2)
}
   0x8   :  { %s64_s15 = scalar_lea.vmem %s15_s7, 256  ;;  %p69_p4 = scmp.lt.s32.totalorder %s15_s7, %s15_s7 }
   0x9   :  { %p65_p3 = scmp.ne.s32.totalorder %s15_s7, %s64_s15  ;;  %p70_p5 = scmp.lt.s32.totalorder %s64_s15, %s64_s15 }
   0xb   :  { %p71_p6 = por %p70_p5, %p69_p4 }
   0xd   :  { %p72_p7 = pnand %p71_p6, %p65_p3 }
   0xf   :  { %75 = shalt.err (!%p72_p7)
}
  0x10   :  { %17 = dma.hbm_to_vmem [thread:$0]  %s138_s0, 256, %s15_s7, [#allocation3]  }
  0x11   :  { %98 = dma.done.wait [#allocation3], 256  }
  0x12   :  { %99 = vsyncadd [#allocation3], 4294967040  ;;  %v21_v0 = vld [vmem:[#allocation2] sm:$0xff]  ;;  %v22_v1 = vld [vmem:[#allocation2 + $0x8] sm:$0xff]  ;;  %s103_s18 = smov [#allocation5]  }
  0x13   :  { %v23_v2 = vmul.f32 0.5, %v21_v0  ;;  %v24_v3 = vmul.f32 0.5, %v22_v1  ;;  %s39_s19 = sshll.u32 %s103_s18, 4  ;;  %s40_s19 = int_to_ptr.vmem [resolvable:$true] %s39_s19 }
  0x14   :  { %s76_s0 = scalar_lea.vmem %s40_s19, 256  ;;  %p81_p9 = scmp.lt.s32.totalorder %s40_s19, %s40_s19 }
  0x15   :  { %50 = vtanh.f32 %v23_v2  ;;  %p77_p8 = scmp.ne.s32.totalorder %s40_s19, %s76_s0  ;;  %p82_p10 = scmp.lt.s32.totalorder %s76_s0, %s76_s0 }
  0x16   :  { %52 = vtanh.f32 %v24_v3 }
  0x17   :  { %p83_p11 = por %p82_p10, %p81_p9 }
  0x19   :  { %p84_p12 = pnand %p83_p11, %p77_p8 }
  0x1f   :  { %v51_v4 = vpop.eup %50 }
  0x20   :  { %v53_v5 = vpop.eup %52  ;;  %v27_v6 = vadd.f32 1.0, %v51_v4 }
  0x21   :  { %v28_v7 = vadd.f32 1.0, %v53_v5 }
  0x22   :  { %v29_v8 = vmul.f32 %v27_v6, %v23_v2 }
  0x23   :  { %v30_v9 = vmul.f32 %v28_v7, %v24_v3 }
  0x24   :  { %31 = vst [vmem:[#allocation5] sm:$0xff] %v29_v8 }
  0x25   :  { %32 = vst [vmem:[#allocation5 + $0x8] sm:$0xff] %v30_v9 }
  0x26   :  { %87 = shalt.err (!%p84_p12)
}
  0x27   :  { %s88_s22 = scalar_lea.hbm %s139_s1, 256 }
  0x28   :  { %p89_p13 = scmp.ne.s32.totalorder %s139_s1, %s88_s22  ;;  %p92_p0 = scmp.lt.u32.totalorder %s88_s22, %s139_s1 }
  0x2a   :  { %p94_p1 = pnand %p92_p0, %p89_p13 }
  0x2c   :  { %97 = shalt.err (!%p94_p1)
}
  0x2d   :  { %42 = dma.vmem_to_hbm [thread:$0]  %s40_s19, 256, %s139_s1, [#allocation4]  }
  0x2e   :  { %100 = dma.done.wait [#allocation4], 256  }
  0x2f   :  { %101 = vsyncadd [#allocation4], 4294967040 }
  0x30   :  { %46 = vsyncpa [#allocation3], 1 }
  0x31   :  { %47 = vsyncpa [#allocation4], 1 }

</bundles_post_ra>
